<compile_context>
chip_gen: v7x
topology: tpu7x:2x2x1
jax: 0.10.0
libtpu: 0.0.40
codegen_flags: <defaults>
</compile_context>

<pallas_src>
import jax
import jax.numpy as jnp
from jax.experimental import pallas as pl
from jax.experimental.pallas import tpu as pltpu

num_UAV = 1
N_actions = 4 * num_UAV          # 4
location_DEV = 2
location_UAV = 2
num_DEV = 50
N_states = location_UAV * num_UAV + location_DEV * num_DEV   # 102
HIDDEN = 50

D_HID = 128      # hidden width padded to one full 128-lane tile (50 real + 78 zero)

_GRID_MIN_B = 64     # below this, a grid is pure serial-loop overhead
_MAX_TILE_B = 2048   # (2048, 128) f32 in + (2048, 4) out double-buffered is ~2 MiB


def net_kernel(x_ref, w1_ref, b1_ref, w2_ref, b2_ref, out_ref):
    """out = relu(x @ W1p + b1p) @ W2p + b2p   (bf16 MXU operands, f32 accum)."""
    x = x_ref[...].astype(jnp.bfloat16)                                # (b, 102)
    h = jnp.dot(x, w1_ref[...], preferred_element_type=jnp.float32)    # (b, 128)
    h = jnp.maximum(h + b1_ref[...], 0.0)                              # f32 VPU (v5e-safe)
    o = jnp.dot(h.astype(jnp.bfloat16), w2_ref[...],
                preferred_element_type=jnp.float32)                    # (b, 4)
    out_ref[...] = (o + b2_ref[...]).astype(out_ref.dtype)


def prepare_params(w1, b1, w2, b2):
    """One-time layout prep from PyTorch nn.Linear layout.

    Args:
      w1: (HIDDEN, N_states), b1: (HIDDEN,)
      w2: (N_actions, HIDDEN), b2: (N_actions,)
    Returns:
      w1p: (N_states, D_HID) bf16  -- W1^T, zero-padded to 128 hidden lanes
      b1p: (1, D_HID)        f32   -- b1, zero-padded
      w2p: (D_HID, N_actions) bf16 -- W2^T, zero-padded hidden rows
      b2p: (1, N_actions)    f32
    """
    w1p = jnp.zeros((N_states, D_HID), jnp.float32)
    w1p = w1p.at[:, :HIDDEN].set(w1.T.astype(jnp.float32)).astype(jnp.bfloat16)
    b1p = jnp.zeros((1, D_HID), jnp.float32).at[0, :HIDDEN].set(b1.astype(jnp.float32))

    w2p = jnp.zeros((D_HID, N_actions), jnp.float32)
    w2p = w2p.at[:HIDDEN, :].set(w2.T.astype(jnp.float32)).astype(jnp.bfloat16)
    b2p = b2.astype(jnp.float32).reshape(1, N_actions)
    return w1p, b1p, w2p, b2p


def _pick_tile_b(B):
    """None -> gridless single block; else a sublane-aligned 2-way (or more) split."""
    if B < _GRID_MIN_B:
        return None
    tile = (B // 2 // 8) * 8          # >= 2 grid steps so v7x's 2nd core gets work
    return max(8, min(_MAX_TILE_B, tile))


def _gridless_call(x, w1p, b1p, w2p, b2p):
    B = x.shape[0]
    return pl.pallas_call(
        net_kernel,
        out_shape=jax.ShapeDtypeStruct((B, N_actions), jnp.float32),
        in_specs=[pl.BlockSpec(memory_space=pltpu.VMEM)] * 5,
        out_specs=pl.BlockSpec(memory_space=pltpu.VMEM),
    )(x, w1p, b1p, w2p, b2p)


def _gridded_call(x, w1p, b1p, w2p, b2p, tile_b):
    B = x.shape[0]
    return pl.pallas_call(
        net_kernel,
        out_shape=jax.ShapeDtypeStruct((B, N_actions), jnp.float32),
        grid=(pl.cdiv(B, tile_b),),
        in_specs=[
            pl.BlockSpec((tile_b, N_states), lambda i: (i, 0)),   # x tile
            pl.BlockSpec((N_states, D_HID), lambda i: (0, 0)),    # W1p (resident)
            pl.BlockSpec((1, D_HID), lambda i: (0, 0)),           # b1p
            pl.BlockSpec((D_HID, N_actions), lambda i: (0, 0)),   # W2p
            pl.BlockSpec((1, N_actions), lambda i: (0, 0)),       # b2p
        ],
        out_specs=pl.BlockSpec((tile_b, N_actions), lambda i: (i, 0)),
        compiler_params=pltpu.CompilerParams(
            dimension_semantics=("parallel",)),
    )(x, w1p, b1p, w2p, b2p)


@jax.jit
def net_forward(x, w1p, b1p, w2p, b2p):
    """Forward pass of Net.

    Args:
      x: (B, N_states) float32 state batch
      w1p, b1p, w2p, b2p: outputs of prepare_params
    Returns:
      (B, N_actions) float32 actions_value
    """
    x = x.astype(jnp.float32)
    tile_b = _pick_tile_b(x.shape[0])        # static shape -> Python branch ok under jit
    if tile_b is None:
        return _gridless_call(x, w1p, b1p, w2p, b2p)
    return _gridded_call(x, w1p, b1p, w2p, b2p, tile_b)


def init_params(key):
    """Parameter init mirroring the PyTorch __init__ (weights ~ N(0, 0.1),
    biases U(-1/sqrt(fan_in), 1/sqrt(fan_in)) like PyTorch's default)."""
    k1, k2, k3, k4 = jax.random.split(key, 4)
    w1 = 0.1 * jax.random.normal(k1, (HIDDEN, N_states), dtype=jnp.float32)
    w2 = 0.1 * jax.random.normal(k2, (N_actions, HIDDEN), dtype=jnp.float32)
    bound1 = 1.0 / (N_states ** 0.5)
    bound2 = 1.0 / (HIDDEN ** 0.5)
    b1 = jax.random.uniform(k3, (HIDDEN,), jnp.float32, -bound1, bound1)
    b2 = jax.random.uniform(k4, (N_actions,), jnp.float32, -bound2, bound2)
    return w1, b1, w2, b2


def _reference(x, w1, b1, w2, b2):
    """Pure-JAX f32 reference identical to the PyTorch forward."""
    return jnp.maximum(x @ w1.T + b1, 0.0) @ w2.T + b2


if __name__ == "__main__":
    key = jax.random.PRNGKey(0)
    kx, kx2, kp = jax.random.split(key, 3)

    # Parameters prepared ONCE in the padded bf16 layout.
    w1, b1, w2, b2 = init_params(kp)
    params = jax.block_until_ready(prepare_params(w1, b1, w2, b2))

    # --- small batch (action selection) -> gridless single-block path ---
    B = 8
    x = jax.random.normal(kx, (B, N_states), dtype=jnp.float32)
    out = jax.block_until_ready(net_forward(x, *params))
    ref = _reference(x, w1, b1, w2, b2)
    assert out.shape == (B, N_actions)
    # bf16 MXU operands (f32 accumulation) -> loosened tolerance vs f32 reference.
    assert jnp.allclose(out, ref, atol=2e-2, rtol=2e-2), float(jnp.max(jnp.abs(out - ref)))

    # --- replay-sized batch -> gridded path, parallel batch axis (2 tiles) ---
    B2 = 256
    x2 = jax.random.normal(kx2, (B2, N_states), dtype=jnp.float32)
    out2 = jax.block_until_ready(net_forward(x2, *params))
    ref2 = _reference(x2, w1, b1, w2, b2)
    assert out2.shape == (B2, N_actions)
    assert jnp.allclose(out2, ref2, atol=2e-2, rtol=2e-2), float(jnp.max(jnp.abs(out2 - ref2)))

    print("KERNEL_OK")
</pallas_src>

<mosaic_0001>
module attributes {stable_mosaic.version = 11 : i64} {
  func.func @net_kernel(%arg0: memref<8x102xf32, #tpu.memory_space<vmem>>, %arg1: memref<102x128xbf16, #tpu.memory_space<vmem>>, %arg2: memref<1x128xf32, #tpu.memory_space<vmem>>, %arg3: memref<128x4xbf16, #tpu.memory_space<vmem>>, %arg4: memref<1x4xf32, #tpu.memory_space<vmem>>, %arg5: memref<8x4xf32, #tpu.memory_space<vmem>>) attributes {dimension_semantics = [], scalar_prefetch = 0 : i64, scratch_operands = 0 : i64, tpu.core_type = #tpu.core_type<tc>} {
    %c0 = arith.constant 0 : index
    %c0_0 = arith.constant 0 : index
    %0 = vector.load %arg0[%c0, %c0_0] : memref<8x102xf32, #tpu.memory_space<vmem>>, vector<8x102xf32>
    %1 = arith.truncf %0 : vector<8x102xf32> to vector<8x102xbf16>
    %c0_1 = arith.constant 0 : index
    %c0_2 = arith.constant 0 : index
    %2 = vector.load %arg1[%c0_1, %c0_2] : memref<102x128xbf16, #tpu.memory_space<vmem>>, vector<102x128xbf16>
    %cst = arith.constant dense<0.000000e+00> : vector<8x128xf32>
    %3 = tpu.matmul %1, %2, %cst {dimension_numbers = #tpu.dot_dimension_numbers<[1], [0], [0], [1], [0, 0, 1, 1], [], []>} : vector<8x102xbf16>, vector<102x128xbf16>, vector<8x128xf32> -> vector<8x128xf32>
    %c0_3 = arith.constant 0 : index
    %c0_4 = arith.constant 0 : index
    %4 = vector.load %arg2[%c0_3, %c0_4] : memref<1x128xf32, #tpu.memory_space<vmem>>, vector<1x128xf32>
    %5 = vector.broadcast %4 : vector<1x128xf32> to vector<8x128xf32>
    %6 = arith.addf %3, %5 : vector<8x128xf32>
    %cst_5 = arith.constant 0.000000e+00 : f32
    %7 = vector.broadcast %cst_5 : f32 to vector<8x128xf32>
    %8 = arith.maximumf %6, %7 : vector<8x128xf32>
    %9 = arith.truncf %8 : vector<8x128xf32> to vector<8x128xbf16>
    %c0_6 = arith.constant 0 : index
    %c0_7 = arith.constant 0 : index
    %10 = vector.load %arg3[%c0_6, %c0_7] : memref<128x4xbf16, #tpu.memory_space<vmem>>, vector<128x4xbf16>
    %cst_8 = arith.constant dense<0.000000e+00> : vector<8x4xf32>
    %11 = tpu.matmul %9, %10, %cst_8 {dimension_numbers = #tpu.dot_dimension_numbers<[1], [0], [0], [1], [0, 0, 1, 1], [], []>} : vector<8x128xbf16>, vector<128x4xbf16>, vector<8x4xf32> -> vector<8x4xf32>
    %c0_9 = arith.constant 0 : index
    %c0_10 = arith.constant 0 : index
    %12 = vector.load %arg4[%c0_9, %c0_10] : memref<1x4xf32, #tpu.memory_space<vmem>>, vector<1x4xf32>
    %13 = vector.broadcast %12 : vector<1x4xf32> to vector<8x4xf32>
    %14 = arith.addf %11, %13 : vector<8x4xf32>
    %c0_11 = arith.constant 0 : index
    %c0_12 = arith.constant 0 : index
    %15 = vector.load %arg5[%c0_11, %c0_12] : memref<8x4xf32, #tpu.memory_space<vmem>>, vector<8x4xf32>
    tpu.vector_store %arg5[%c0_11, %c0_12], %14 {strides = array<i32>} : memref<8x4xf32, #tpu.memory_space<vmem>>, vector<8x4xf32>,
    return
  }
}

</mosaic_0001>

<bundles_post_ra>
// kernel: net_forward.1
= control target key start
LH: loop header
LB: loop body
LE: loop exit
PB: predicated region body
PF: predicated region fallthrough
CT: control target
= control target key end

     0   :  { %v339_v0 = vmov 0.0   ;;  %vm340_vm0 = vmmov 0   ;;  %vm86_vm1 = vcmask 1042432   ;;  %vm82_vm2 = vcmask 834560   ;;  %s428_s1 = inlined_call_operand.vmem [shape: bf16[102,128], index: 1, kind: input, shape index: {}]   ;;  %s429_s3 = inlined_call_operand.vmem [shape: bf16[128,4], index: 3, kind: input, shape index: {}]   ;;  %s430_s0 = inlined_call_operand.vmem [shape: f32[8,102], index: 0, kind: input, shape index: {}]   ;;  %s431_s2 = inlined_call_operand.vmem [shape: f32[1,128], index: 2, kind: input, shape index: {}]   ;;  %s432_s4 = inlined_call_operand.vmem [shape: f32[1,4], index: 4, kind: input, shape index: {}]   ;;  %s433_s5 = inlined_call_operand.vmem [shape: f32[8,4], index: 5, kind: output, shape index: {}]  }
   0x1   :  { %284 = vmatprep.subr.bf16.mxu0 %v339_v0  ;;  %v324_v1 = vld [vmem:[%s428_s1] sm:$0xff]   ;;  %298 = vmatprep.mubr.msk.bf16.mxu0 %vm340_vm0, %v339_v0  ;;  %v325_v2 = vld [vmem:[%s428_s1 + $0x8] sm:$0xff]   ;;  %v326_v3 = vld [vmem:[%s428_s1 + $0x10] sm:$0xff]   ;;  %vm243_vm3 = vcmask 31744  }
   0x2   :  { %302 = vmatprep.subr.bf16.mxu1 %v339_v0  ;;  %318 = vmatprep.mubr.msk.bf16.mxu1 %vm340_vm0, %v339_v0  ;;  %v331_v4 = vld [vmem:[%s429_s3] sm:$0xff]   ;;  %v332_v5 = vld [vmem:[%s429_s3 + $0x8] sm:$0xff]   ;;  %v327_v6 = vld [vmem:[%s428_s1 + $0x18] sm:$0xff]  }
   0x3   :  { %285 = vmatpush3.bf16.msra.mxu0 %v324_v1  ;;  %303 = vmatpush3.bf16.msra.mxu1 %v331_v4  ;;  %v333_v7 = vld [vmem:[%s429_s3 + $0x10] sm:$0xff]   ;;  %v328_v8 = vld [vmem:[%s428_s1 + $0x20] sm:$0xff]   ;;  %v334_v9 = vld [vmem:[%s429_s3 + $0x18] sm:$0xff]  }
   0x4   :  { %286 = vmatprep.subr.bf16.mxu0 %v339_v0  ;;  %304 = vmatprep.subr.bf16.mxu1 %v339_v0  ;;  %v329_v10 = vld [vmem:[%s428_s1 + $0x28] sm:$0xff]   ;;  %v330_v11 = vld [vmem:[%s428_s1 + $0x30] ss:$0 sps:$4 sm:$0x77]   ;;  %v335_v12 = vld [vmem:[%s429_s3 + $0x20] sm:$0xff]  }
   0x5   :  { %v21_v13 = vld [vmem:[%s430_s0] sm:$0xff]  ;;  %v88_v14 = vsel %vm86_vm1, %v330_v11, 0  ;;  %v336_v16 = vld [vmem:[%s429_s3 + $0x28] sm:$0xff]   ;;  %v337_v17 = vld [vmem:[%s429_s3 + $0x30] sm:$0xff]  }
   0x6   :  { %v22_v15 = vpack.c.bf16 %v21_v13, %v21_v13  ;;  %v338_v18 = vld [vmem:[%s429_s3 + $0x38] sm:$0xff]   ;;  %v249_v19 = vld [vmem:[%s431_s2] ss:$0 sm:$0xff] }
   0x7   :  { %287 = vmatpush3.bf16.msra.mxu0 %v325_v2  ;;  %305 = vmatpush3.bf16.msra.mxu1 %v332_v5  ;;  %v258_v27 = vld [vmem:[%s432_s4] ss:$0 sm:$0xff] }
   0x8   :  { %288 = vmatprep.subr.bf16.mxu0 %v339_v0  ;;  %306 = vmatprep.subr.bf16.mxu1 %v339_v0 }
   0xb   :  { %289 = vmatpush3.bf16.msra.mxu0 %v326_v3  ;;  %307 = vmatpush3.bf16.msra.mxu1 %v333_v7 }
   0xc   :  { %290 = vmatprep.subr.bf16.mxu0 %v339_v0  ;;  %308 = vmatprep.subr.bf16.mxu1 %v339_v0 }
   0xf   :  { %291 = vmatpush3.bf16.msra.mxu0 %v327_v6  ;;  %309 = vmatpush3.bf16.msra.mxu1 %v334_v9 }
  0x10   :  { %292 = vmatprep.subr.bf16.mxu0 %v339_v0  ;;  %310 = vmatprep.subr.bf16.mxu1 %v339_v0 }
  0x13   :  { %293 = vmatpush3.bf16.msra.mxu0 %v328_v8  ;;  %311 = vmatpush3.bf16.msra.mxu1 %v335_v12 }
  0x14   :  { %294 = vmatprep.subr.bf16.mxu0 %v339_v0  ;;  %312 = vmatprep.subr.bf16.mxu1 %v339_v0 }
  0x17   :  { %295 = vmatpush3.bf16.msra.mxu0 %v329_v10  ;;  %313 = vmatpush3.bf16.msra.mxu1 %v336_v16 }
  0x18   :  { %296 = vmatprep.subr.bf16.mxu0 %v339_v0  ;;  %314 = vmatprep.subr.bf16.mxu1 %v339_v0 }
  0x1b   :  { %297 = vmatpush3.bf16.msra.mxu0 %v88_v14  ;;  %315 = vmatpush3.bf16.msra.mxu1 %v337_v17 }
  0x1c   :  { %316 = vmatprep.subr.bf16.mxu1 %v339_v0 }
  0x1e   :  { %299 = vmatmul.mubr.msk.bf16.vlgmr.msra.gmra.mrb[0].mxu0 %vm82_vm2, %v22_v15 }
  0x1f   :  { %317 = vmatpush3.bf16.msra.mxu1 %v338_v18 }
  0xf1   :  { %v124_v20 = vpop.f32.mrb[0].mxu0 }
  0xf2   :  { %v125_v21 = vadd.f32 %v249_v19, %v124_v20  ;;  %v300_v22 = vpop.f32.mrb[1].mxu0 }
  0xf3   :  { %v127_v23 = vpop.f32.mrb[2].mxu0 }
  0xf4   :  { %v130_v24 = vmax.f32 %v125_v21, 0.0  ;;  %v301_v25 = vpop.f32.mrb[3].mxu0 }
  0xf6   :  { %v131_v26 = vpack.c.bf16 %v130_v24, %v130_v24 }
  0xf8   :  { %319 = vmatmul.mubr.bf16.vlgmr.msra.gmra.mrb[0].mxu1 %v131_v26 }
 0x1cb   :  { %v237_v28 = vpop.f32.mrb[0].mxu1 }
 0x1cc   :  { %v238_v29 = vadd.f32 %v258_v27, %v237_v28  ;;  %v320_v30 = vpop.f32.mrb[1].mxu1 }
 0x1cd   :  { %v240_v31 = vpop.f32.mrb[2].mxu1 }
 0x1ce   :  { %244 = vst.msk [vmem:[%s433_s5] sm:$0xff] %vm243_vm3, %v238_v29  ;;  %v321_v32 = vpop.f32.mrb[3].mxu1 }

</bundles_post_ra>
